<compile_context>
chip_gen: v7x
topology: tpu7x:2x2x1
jax: 0.10.0
libtpu: 0.0.40
codegen_flags: <defaults>
</compile_context>

<pallas_src>
import functools

import jax
import jax.numpy as jnp
from jax.experimental import pallas as pl
from jax.experimental.pallas import tpu as pltpu


def _round_up(n: int, m: int) -> int:
    return ((n + m - 1) // m) * m


def _mlm_kernel(x_ref, w_ref, b_ref, o_ref):
    # Single MXU pass over the whole reduction dim; f32 accumulate + epilogue.
    y = jnp.dot(x_ref[...], w_ref[...], preferred_element_type=jnp.float32)
    y = y + b_ref[...]                       # (tm, tn) + (1, tn), f32
    o_ref[...] = jnp.log1p(jnp.maximum(y, 0.0)).astype(o_ref.dtype)


def _mlm_kernel_scaled(x_ref, w_ref, s_ref, b_ref, o_ref):
    # Weight-only quantized path (e.g. int8 weights): dequant scale is per
    # output channel and folded into the f32 epilogue next to the bias add.
    y = jnp.dot(
        x_ref[...].astype(jnp.float32),
        w_ref[...].astype(jnp.float32),
        preferred_element_type=jnp.float32,
    )
    y = y * s_ref[...] + b_ref[...]          # (tm, tn) * (1, tn) + (1, tn)
    o_ref[...] = jnp.log1p(jnp.maximum(y, 0.0)).astype(o_ref.dtype)


@functools.partial(jax.jit, static_argnames=("tm", "tn", "out_dtype"))
def mlm_forward(x, w, b, w_scale=None, *, tm=None, tn=None, out_dtype=None):
    """log1p(relu(x @ w + b)).

    x: (B, D) dense vectors, w: (D, V) weights (transposed vs nn.Linear),
    b: (V,) bias (added in f32), w_scale: optional (V,) f32 per-output-channel
    dequant scale for weight-only-quantized w.  Returns (B, V) in `out_dtype`
    (default: x.dtype).
    """
    B, D = x.shape
    Dw, V = w.shape
    assert Dw == D and b.shape == (V,)
    if out_dtype is None:
        out_dtype = x.dtype

    x_bytes = jnp.dtype(x.dtype).itemsize
    w_bytes = jnp.dtype(w.dtype).itemsize
    o_bytes = jnp.dtype(out_dtype).itemsize

    # Sublane-packing multiple for the batch (row) dim: 8 for 4-byte dtypes,
    # 16 for 2-byte, 32 for 1-byte.
    sub = 32 // min(x_bytes, o_bytes)

    # --- batch tile ---------------------------------------------------------
    if tm is None:
        tm = 256                      # MXU-friendly cap (v6e/v7x 256x256 MXU)
    tm = min(tm, B)                   # never exceed the array extent
    if tm < B:
        tm = _round_up(tm, sub)       # interior blocks must be sublane-aligned
        if tm >= B:
            tm = B                    # degenerate: single full-batch block
    n_b = pl.cdiv(B, tm)

    # --- vocab tile (lane-dense, wide) --------------------------------------
    auto_tn = tn is None
    if auto_tn:
        tn = 2048                     # >= ~1 MiB of weight+output per step
    tn = min(tn, V)
    if tn < V:
        tn = _round_up(tn, 128)
        if tn >= V:
            tn = V
    n_v = pl.cdiv(V, tn)
    # Keep the megacore-sharded (outer, parallel) V axis even so both v7x
    # TensorCores stream disjoint halves of the weight matrix.
    if auto_tn and n_v % 2 == 1 and V >= 256:
        tn_even = _round_up(pl.cdiv(V, n_v + 1), 128)
        if tn_even < V:
            tn = tn_even
            n_v = pl.cdiv(V, tn)

    b2 = b.reshape(1, V).astype(jnp.float32)     # bias added in f32 epilogue

    # Grid: V tiles outer, B tiles inner -> weight block index constant across
    # consecutive inner steps (weight-stationary; no re-DMA of the big stream).
    grid = (n_v, n_b)
    x_spec = pl.BlockSpec((tm, D), lambda j, i: (i, 0))
    w_spec = pl.BlockSpec((D, tn), lambda j, i: (0, j))
    col_spec = pl.BlockSpec((1, tn), lambda j, i: (0, j))
    out_spec = pl.BlockSpec((tm, tn), lambda j, i: (i, j))

    # Explicit VMEM budget: double-buffered tiles + headroom.  Avoids relying
    # on the generation-dependent scoped default (16 MiB v5e, 32 MiB v6e/v7x),
    # capped well under v7x's 64 MiB physical VMEM.
    per_step = (tm * D * x_bytes + D * tn * w_bytes + tm * tn * o_bytes
                + 2 * 8 * tn * 4)
    vmem_limit = int(min(2 * per_step + (8 << 20), 60 << 20))

    compiler_params = pltpu.CompilerParams(
        dimension_semantics=("parallel", "parallel"),
        vmem_limit_bytes=vmem_limit,
    )

    if w_scale is None:
        kernel = _mlm_kernel
        in_specs = [x_spec, w_spec, col_spec]
        args = (x, w, b2)
    else:
        assert w_scale.shape == (V,)
        s2 = w_scale.reshape(1, V).astype(jnp.float32)
        kernel = _mlm_kernel_scaled
        in_specs = [x_spec, w_spec, col_spec, col_spec]
        args = (x, w, s2, b2)

    return pl.pallas_call(
        kernel,
        out_shape=jax.ShapeDtypeStruct((B, V), out_dtype),
        grid_spec=pltpu.PrefetchScalarGridSpec(
            num_scalar_prefetch=0,
            grid=grid,
            in_specs=in_specs,
            out_specs=out_spec,
        ),
        compiler_params=compiler_params,
    )(*args)


if __name__ == "__main__":
    # Small synthetic shapes consistent with the module:
    #   dense_size = 32 (CLIP text embedding stand-in), vocab_size = 512, batch = 8
    B, D, V = 8, 32, 512

    key = jax.random.PRNGKey(0)
    kx, kw, kb = jax.random.split(key, 3)

    x = jax.random.normal(kx, (B, D), dtype=jnp.float32)
    # Deterministic "nn.Linear"-style init (uniform in +/- 1/sqrt(D)).
    bound = 1.0 / jnp.sqrt(jnp.float32(D))
    w = jax.random.uniform(kw, (D, V), dtype=jnp.float32, minval=-bound, maxval=bound)
    b = jax.random.uniform(kb, (V,), dtype=jnp.float32, minval=-bound, maxval=bound)

    # Reference (plain JAX), same semantics as the PyTorch module.
    ref = jnp.log1p(jnp.maximum(x @ w + b, 0.0))

    # 1) f32 path: exact module semantics.  Auto tiling -> grid (2, 1): the V
    #    axis has even extent so both v7x TensorCores get work.
    out = jax.block_until_ready(mlm_forward(x, w, b))
    assert out.shape == (B, V)
    assert jnp.allclose(out, ref, atol=1e-5, rtol=1e-5)

    # 2) bf16-stored weights/activations (cast ONCE here, i.e. they "live" in
    #    bf16 -> half the HBM weight bytes); f32 accumulate/epilogue, f32 out.
    x_bf = x.astype(jnp.bfloat16)
    w_bf = w.astype(jnp.bfloat16)
    out_bf = jax.block_until_ready(mlm_forward(x_bf, w_bf, b, out_dtype=jnp.float32))
    assert out_bf.shape == (B, V)
    assert jnp.allclose(out_bf, ref, atol=2e-2, rtol=2e-2)

    # 3) int8 weight-only quantization (per-output-channel scale, dequant in
    #    the f32 epilogue) -- 4x less weight HBM traffic on v5e/v6e.
    scale = jnp.max(jnp.abs(w), axis=0) / 127.0
    w_q = jnp.round(w / scale).astype(jnp.int8)
    out_q = jax.block_until_ready(mlm_forward(x, w_q, b, w_scale=scale))
    assert out_q.shape == (B, V)
    assert jnp.allclose(out_q, ref, atol=5e-2, rtol=5e-2)

    # 4) Ragged shapes (B not a sublane multiple, V not a tile multiple):
    #    handled by cdiv grids + masked boundary blocks -- no pad, no slice.
    Br, Vr = 5, 500
    xr, wr, br = x[:Br], w[:, :Vr], b[:Vr]
    ref_r = jnp.log1p(jnp.maximum(xr @ wr + br, 0.0))
    out_r = jax.block_until_ready(mlm_forward(xr, wr, br))
    assert out_r.shape == (Br, Vr)
    assert jnp.allclose(out_r, ref_r, atol=1e-5, rtol=1e-5)

    print("KERNEL_OK")
</pallas_src>

<mosaic_0001>
module attributes {stable_mosaic.version = 11 : i64} {
  func.func @_mlm_kernel(%arg0: i32, %arg1: i32, %arg2: memref<8x32xf32, #tpu.memory_space<vmem>>, %arg3: memref<32x256xf32, #tpu.memory_space<vmem>>, %arg4: memref<1x256xf32, #tpu.memory_space<vmem>>, %arg5: memref<8x256xf32, #tpu.memory_space<vmem>>) attributes {dimension_semantics = [#tpu.dimension_semantics<parallel>, #tpu.dimension_semantics<parallel>], iteration_bounds = array<i64: 2, 1>, scalar_prefetch = 0 : i64, scratch_operands = 0 : i64, tpu.core_type = #tpu.core_type<tc>, window_params = [{transform_indices = @transform_0, window_bounds = array<i64: 8, 32>}, {transform_indices = @transform_1, window_bounds = array<i64: 32, 256>}, {transform_indices = @transform_2, window_bounds = array<i64: 1, 256>}, {transform_indices = @transform_3, window_bounds = array<i64: 8, 256>}]} {
    %c0 = arith.constant 0 : index
    %c0_0 = arith.constant 0 : index
    %0 = vector.load %arg2[%c0, %c0_0] : memref<8x32xf32, #tpu.memory_space<vmem>>, vector<8x32xf32>
    %c0_1 = arith.constant 0 : index
    %c0_2 = arith.constant 0 : index
    %1 = vector.load %arg3[%c0_1, %c0_2] : memref<32x256xf32, #tpu.memory_space<vmem>>, vector<32x256xf32>
    %cst = arith.constant dense<0.000000e+00> : vector<8x256xf32>
    %2 = tpu.matmul %0, %1, %cst {dimension_numbers = #tpu.dot_dimension_numbers<[1], [0], [0], [1], [0, 0, 1, 1], [], []>} : vector<8x32xf32>, vector<32x256xf32>, vector<8x256xf32> -> vector<8x256xf32>
    %c0_3 = arith.constant 0 : index
    %c0_4 = arith.constant 0 : index
    %3 = vector.load %arg4[%c0_3, %c0_4] : memref<1x256xf32, #tpu.memory_space<vmem>>, vector<1x256xf32>
    %4 = vector.broadcast %3 : vector<1x256xf32> to vector<8x256xf32>
    %5 = arith.addf %2, %4 : vector<8x256xf32>
    %cst_5 = arith.constant 0.000000e+00 : f32
    %6 = vector.broadcast %cst_5 : f32 to vector<8x256xf32>
    %7 = arith.maximumf %5, %6 : vector<8x256xf32>
    %8 = math.log1p %7 : vector<8x256xf32>
    %c0_6 = arith.constant 0 : index
    %c0_7 = arith.constant 0 : index
    %9 = vector.load %arg5[%c0_6, %c0_7] : memref<8x256xf32, #tpu.memory_space<vmem>>, vector<8x256xf32>
    tpu.vector_store %arg5[%c0_6, %c0_7], %8 {strides = array<i32>} : memref<8x256xf32, #tpu.memory_space<vmem>>, vector<8x256xf32>,
    return
  }
  func.func @transform_0(%arg0: i32, %arg1: i32) -> (i32, i32) {
    %c0_i32 = arith.constant 0 : i32
    %c0_i32_0 = arith.constant 0 : i32
    return %arg1, %c0_i32 : i32, i32
  }
  func.func @transform_1(%arg0: i32, %arg1: i32) -> (i32, i32) {
    %c0_i32 = arith.constant 0 : i32
    %c0_i32_0 = arith.constant 0 : i32
    return %c0_i32, %arg0 : i32, i32
  }
  func.func @transform_2(%arg0: i32, %arg1: i32) -> (i32, i32) {
    %c0_i32 = arith.constant 0 : i32
    %c0_i32_0 = arith.constant 0 : i32
    return %c0_i32, %arg0 : i32, i32
  }
  func.func @transform_3(%arg0: i32, %arg1: i32) -> (i32, i32) {
    %c0_i32 = arith.constant 0 : i32
    return %arg1, %arg0 : i32, i32
  }
}

</mosaic_0001>

<bundles_post_ra>
// kernel: mlm_forward.1
= control target key start
LH: loop header
LB: loop body
LE: loop exit
PB: predicated region body
PF: predicated region fallthrough
CT: control target
= control target key end

     0   :  { %8 = vsyncpa [#allocation3], 0  ;;  %s990_s0 = inlined_call_operand.hbm [shape: f32[8,32], index: 0, kind: input, shape index: {}]   ;;  %s991_s1 = inlined_call_operand.hbm [shape: f32[32,512], index: 1, kind: input, shape index: {}]   ;;  %s992_s2 = inlined_call_operand.vmem [shape: f32[1,512], index: 2, kind: input, shape index: {}]   ;;  %s993_s3 = inlined_call_operand.hbm [shape: f32[8,512], index: 3, kind: output, shape index: {}]  }
   0x1   :  { %9 = vsyncpa [#allocation6], 0 }
   0x2   :  { %11 = vsyncpa [#allocation6 + $0x1], 0 }
   0x3   :  { %12 = vsyncpa [#allocation4], 0 }
   0x4   :  { %14 = vsyncpa [#allocation4 + $0x1], 0  ;;  %s766_s12 = smov 0   ;;  %s768_s13 = smov 0  }
   0x5   :  { %s770_s14 = smov 0   ;;  %s772_s15 = smov 0  }
   0x6   :  { %s774_s16 = smov 0   ;;  %s776_s17 = smov 0  }
   0x7 LB: > { %s483_s18 = sadd.s32 4294967295, %s737_s17   ;;  %s484_s19 = sadd.s32 4294967294, %s737_s17   ;;  %s737_s17 = sphi %s776_s17, %s20_s17   ;;  %s733_s16 = sphi %s774_s16, %s1021_s16   ;;  %s729_s15 = sphi %s772_s15, %s1020_s15   ;;  %s725_s14 = sphi %s770_s14, %s1019_s14   ;;  %s721_s13 = sphi %s768_s13, %s1018_s13   ;;  %s717_s12 = sphi %s766_s12, %s1017_s12  }
   0x8   : > { %s65_s20 = sadd.s32 1, %s725_s14  ;;  %p72_p0 = scmp.ne.s32.totalorder %s725_s14, %s721_s13 }
   0x9   : > { %p73_p1 = scmp.eq.s32.totalorder %s737_s17, 0  ;;  %p78_p2 = scmp.ne.s32.totalorder %s721_s13, %s717_s12 }
   0xa   : > { %p804_p3 = scmp.eq.s32.totalorder %s483_s18, 0  ;;  %p130_p4 = scmp.eq.s32.totalorder %s483_s18, 1 }
   0xb   : > { %p808_p5 = por %p73_p1, %p72_p0  ;;  %p136_p6 = scmp.eq.s32.totalorder %s484_s19, 1 }
   0xc   : > { %s1000_s21 = scalar_select %p804_p3, 1, 0 }
   0xd   : > { %p814_p7 = por %p804_p3, %p78_p2  ;;  %p818_p8 = por %p130_p4, %p72_p0 }
   0xe   : > { %p822_p9 = por %p136_p6, %p78_p2  ;;  %p485_p10 = scmp.ge.s32.totalorder %s737_s17, 1 }
   0xf   : > { %s1002_s23 = scalar_select %p814_p7, 1, 0 }
  0x10   : > { %s1003_s24 = scalar_select %p818_p8, 1, 0 }
  0x11   : > { %s1004_s25 = scalar_select %p822_p9, 1, 0 }
  0x12   : > { %p143_p11 = scmp.lt.s32.totalorder %s737_s17, 3  ;;  %s739_s27 = smov [#allocation2]  }
  0x13   : > { %s158_s28 = sshll.u32 %s739_s27, 4  ;;  %p533_p1 = scmp.lt.s32.totalorder %s737_s17, 2  ;;  %s159_s28 = int_to_ptr.vmem [resolvable:$true] %s158_s28 }
  0x14   : > { %p829_p13 = pnand %p485_p10, %p143_p11  ;;  %s32_s4 = sadd.s32 1, %s733_s16 }
  0x15   : > { %p838_p4 = pnand %p533_p1, %p808_p5  ;;  %p849_p6 = scmp.ge.s32.totalorder %s32_s4, 2 }
  0x16   : > { %s1005_s26 = scalar_select %p829_p13, 1, 0 }
  0x17   : > { %p520_p0 = pneg %p829_p13  ;;  %s169_s6 = sand.u32 1, %s725_s14  }
  0x18   : > { %s1006_s29 = scalar_select %p838_p4, 1, 0 }
  0x19   : > { %p844_p2 = pnand %p520_p0, %p804_p3  ;;  %s593_s9 = scalar_lea.hbm %s990_s0, 128 }
  0x1a   : > { %s1008_s5 = scalar_select %p849_p6, 1, 0 }
  0x1b   : > { %p594_p5 = scmp.ne.s32.totalorder %s990_s0, %s593_s9  ;;  %p595_p10 = pneg %p844_p2 }
  0x1c   : > { %p600_p0 = scmp.lt.u32.totalorder %s593_s9, %s990_s0 }
  0x1d   : > { %p596_p11 = pnand %p595_p10, %p594_p5 }
  0x1f   : > { %p597_p1 = pneg %p596_p11 }
  0x21   : > { %p602_p12 = pnand %p600_p0, %p597_p1 }
  0x23   : > { %605 = shalt.err (!%p602_p12)
}
  0x24   : > { %s606_s22 = scalar_lea.vmem %s159_s28, 128  ;;  %p614_p3 = scmp.lt.s32.totalorder %s159_s28, %s159_s28 }
  0x25   : > { %p607_p9 = scmp.ne.s32.totalorder %s159_s28, %s606_s22  ;;  %p615_p13 = scmp.lt.s32.totalorder %s606_s22, %s606_s22 }
  0x27   : > { %p609_p8 = pnand %p607_p9, %p595_p10  ;;  %p616_p4 = por %p615_p13, %p614_p3 }
  0x29   : > { %p610_p7 = pneg %p609_p8 }
  0x2b   : > { %p617_p6 = pnand %p616_p4, %p610_p7 }
  0x2d   : > { %620 = shalt.err (!%p617_p6)
}
  0x2e   : > { %523 = dma.hbm_to_vmem [thread:$0]  (!%p844_p2), %s990_s0, 128, %s159_s28, [#allocation3]  }
  0x2f   : > { %p1009_p9 = scmp.ne.s32.totalorder %s1008_s5, 0  ;;  %s488_s8 = sshll.u32 %s169_s6, 6 }
  0x30   : > { %s502_s10 = sshll.u32 %s733_s16, 8  ;;  %s173_s19 = scalar_lea.vmem [#allocation5], %s488_s8 }
  0x31   : > { %s1023_s4 = smov (%p1009_p9, %s32_s4), 0  ;;  %s880_s18 = scalar_lea.hbm %s991_s1, %s502_s10 }
  0x32   : > { %s62_s9 = ssub.s32 %s733_s16, %s1023_s4  ;;  %s180_s22 = sshll.u32 %s173_s19, 4  ;;  %s887_s22 = int_to_ptr.vmem [resolvable:$true] %s180_s22 }
  0x33   : > { %p63_p3 = scmp.eq.s32.totalorder %s62_s9, 0  ;;  %s889_s5 = scalar_lea.sflag [#allocation6], %s169_s6 }
  0x34   : > { %s621_s27 = scalar_lea.hbm %s880_s18, 1024  ;;  %p1010_p8 = scmp.ne.s32.totalorder %s1006_s29, 0 }
  0x35   : > { %s885_s28 = scalar_select %p63_p3, %s725_s14, %s65_s20  }
  0x36   : > { %p622_p7 = scmp.ne.s32.totalorder %s880_s18, %s621_s27  ;;  %p623_p12 = pneg %p1010_p8 }
  0x37   : > { %s626_s8 = scalar_lea.hbm %s991_s1, 2048  ;;  %p627_p2 = scmp.lt.u32.totalorder %s880_s18, %s991_s1 }
  0x38   : > { %p624_p13 = pnand %p623_p12, %p622_p7  ;;  %p628_p6 = scmp.lt.u32.totalorder %s626_s8, %s621_s27 }
  0x39   : > { %p630_p10 = scmp.lt.u32.totalorder %s621_s27, %s880_s18 }
  0x3a   : > { %p625_p4 = pneg %p624_p13  ;;  %p629_p5 = por %p628_p6, %p627_p2 }
  0x3c   : > { %p631_p11 = por %p630_p10, %p629_p5 }
  0x3e   : > { %p632_p1 = pnand %p631_p11, %p625_p4 }
  0x40   : > { %635 = shalt.err (!%p632_p1)
}
  0x41   : > { %s636_s20 = scalar_lea.vmem %s887_s22, 1024  ;;  %s740_s6 = smov [#allocation5]  }
  0x42   : > { %p637_p0 = scmp.ne.s32.totalorder %s887_s22, %s636_s20  ;;  %s641_s11 = sshll.u32 %s740_s6, 4  ;;  %s642_s11 = int_to_ptr.vmem [resolvable:$false] %s641_s11 }
  0x43   : > { %s643_s19 = scalar_lea.vmem %s642_s11, 2048  ;;  %p644_p7 = scmp.lt.s32.totalorder %s887_s22, %s642_s11 }
  0x44   : > { %p639_p9 = pnand %p637_p0, %p623_p12  ;;  %p645_p13 = scmp.lt.s32.totalorder %s643_s19, %s636_s20 }
  0x46   : > { %p640_p3 = pneg %p639_p9  ;;  %p646_p2 = por %p645_p13, %p644_p7 }
  0x48   : > { %p647_p6 = pnand %p646_p2, %p640_p3 }
  0x4a   : > { %650 = shalt.err (!%p647_p6)
}
  0x4b   : > { %s741_s27 = smov 512   ;;  %s742_s7 = smov 256  }
  0x4c   : > { %s743_s9 = smov 16   ;;  %p1011_p12 = scmp.ne.s32.totalorder %s1005_s26, 0 }
  0x4d   : > { %527 = dma.hbm_to_vmem [thread:$0]  (!%p1010_p8), %s880_s18, 1024, %s887_s22, %s889_s5, %s741_s27, %s742_s7, %s743_s9  }
  0x4e   : > { %200 = sbr.rel (%p1011_p12) target bundleno = 348 (0x15c), region = 32  ;;  %p1012_p4 = scmp.ne.s32.totalorder (!%p1011_p12), %s1000_s21, 0 }
  0x55   : > { %704 = dma.done.wait (%p1012_p4), [#allocation3], 128  }
  0x56   : > { %706 = vsyncadd (%p1012_p4), [#allocation3], 4294967168  ;;  %s924_s8 = sand.u32 1, %s721_s13   ;;  %p1013_p5 = scmp.ne.s32.totalorder %s1002_s23, 0 }
  0x57   : > { %s493_s10 = sshll.u32 %s924_s8, 6  ;;  %s207_s30 = scalar_lea.sflag [#allocation6], %s924_s8 }
  0x58   : > { %s210_s20 = scalar_lea.vmem [#allocation5], %s493_s10 }
  0x59   : > { %708 = dma.done.wait (%p1013_p5), %s207_s30, 1024  }
  0x5a   : > { %710 = vsyncadd (%p1013_p5), %s207_s30, 4294966272  ;;  %v744_v0 = vmov 0.0   ;;  %v246_v1 = vld [vmem:[%s210_s20 + $0x8] sm:$0xff]  ;;  %v248_v2 = vld [vmem:[%s210_s20 + $0x18] sm:$0xff]  ;;  %vm265_vm0 = vcmask 261120   ;;  %s495_s21 = sshll.u32 %s729_s15, 1  ;;  %v255_v14 = vlaneseq }
  0x5b   : > { %333 = vmatprep.mubr.f32.mxu0 %v744_v0  ;;  %v245_v3 = vld [vmem:[%s210_s20] sm:$0xff]  ;;  %v504_v4 = vpack.c.bf16 %v248_v2, %v246_v1  ;;  %v247_v5 = vld [vmem:[%s210_s20 + $0x10] sm:$0xff]  ;;  %v250_v6 = vld [vmem:[%s210_s20 + $0x28] sm:$0xff]  ;;  %p239_p8 = scmp.lt.s32.totalorder %s495_s21, 3  ;;  %s494_s18 = sshll.u32 %s924_s8, 4 }
  0x5c   : > { %v252_v7 = vld [vmem:[%s210_s20 + $0x38] sm:$0xff]  ;;  %v506_v8 = vpack.c.bf16 %v247_v5, %v245_v3  ;;  %v249_v10 = vld [vmem:[%s210_s20 + $0x20] sm:$0xff]  ;;  %v251_v11 = vld [vmem:[%s210_s20 + $0x30] sm:$0xff]  ;;  %v256_v15 = vshrl.u32 %v255_v14, 7  ;;  %s503_s22 = sshll.u32 %s729_s15, 8  ;;  %s236_s5 = scalar_lea.vmem [#allocation7], %s494_s18 }
  0x5d   : > { %v508_v9 = vpack.c.bf16 %v252_v7, %v250_v6  ;;  %505 = vmatprep.subr.bf16.mxu0 %v504_v4  ;;  %v510_v12 = vpack.c.bf16 %v251_v11, %v249_v10  ;;  %v244_v13 = vld [vmem:[#allocation2] sm:$0xff]  ;;  %s1025_s21 = smov (!%p239_p8, %s495_s21), 3  ;;  %s379_s6 = sshll.u32 %s236_s5, 4  ;;  %s943_s6 = int_to_ptr.vmem [resolvable:$true] %s379_s6 }
  0x5e   : > { %507 = vmatpush1.bf16.msra.mxu0 %v506_v8  ;;  %s241_s29 = scalar_lea.vmem %s992_s2, %s1025_s21  ;;  %v257_v16 = vsub.s32 0, %v256_v15  ;;  %v261_v18 = vsub.s32 1, %v256_v15  ;;  %s941_s27 = scalar_lea.hbm %s993_s3, %s503_s22 }
  0x5f   : > { %509 = vmatprep.subr.bf16.mxu0 %v508_v9  ;;  %v253_v17 = vld [vmem:[%s241_s29] sm:$0x3]  ;;  %s363_s15 = scalar_lea.sflag [#allocation4], %s924_s8  ;;  %s651_s7 = scalar_lea.vmem %s943_s6, 256 }
  0x60   : > { %v258_v19 = vrot.slane %v253_v17, %v257_v16  ;;  %v262_v20 = vrot.slane %v253_v17, %v261_v18  ;;  %p652_p10 = scmp.ne.s32.totalorder %s943_s6, %s651_s7  ;;  %p1014_p11 = scmp.ne.s32.totalorder %s1003_s24, 0 }
  0x61   : > { %s745_s9 = smov [#allocation7]  }
  0x62   : > { %511 = vmatpush1.bf16.msra.mxu0 %v510_v12  ;;  %p653_p1 = pnand %p652_p10, %p1014_p11  ;;  %s655_s10 = sshll.u32 %s745_s9, 4  ;;  %s656_s10 = int_to_ptr.vmem [resolvable:$false] %s655_s10 }
  0x63   : > { %s657_s30 = scalar_lea.vmem %s656_s10, 512  ;;  %p658_p9 = scmp.lt.s32.totalorder %s943_s6, %s656_s10 }
  0x64   : > { %p654_p0 = pneg %p653_p1  ;;  %p659_p3 = scmp.lt.s32.totalorder %s657_s30, %s651_s7 }
  0x65   : > { %496 = vmatmul.mubr.msk.f32.vlgmr.msra.gmra.mrb[0].mxu0 %vm265_vm0, %v244_v13 }
  0x66   : > { %p660_p7 = por %p659_p3, %p658_p9 }
  0x68   : > { %p661_p13 = pnand %p660_p7, %p654_p0 }
 0x138   : > { %v335_v21 = vpop.f32.mrb[0].mxu0 }
 0x139   : > { %v336_v22 = vadd.f32 %v335_v21, %v258_v19  ;;  %v337_v23 = vpop.f32.mrb[1].mxu0 }
 0x13a   : > { %v338_v24 = vadd.f32 %v337_v23, %v262_v20 }
 0x13b   : > { %v340_v25 = vmax.f32 %v336_v22, 0.0 }
 0x13c   : > { %v341_v26 = vmax.f32 %v338_v24, 0.0 }
 0x13d   : > { %v342_v27 = vadd.f32 1.0, %v340_v25  ;;  %v345_v29 = vmul.f32 -0.5, %v340_v25  ;;  %v348_v32 = vand.u32 2147483647, %v340_v25 }
 0x13e   : > { %v351_v28 = vadd.f32 1.0, %v341_v26  ;;  %v354_v30 = vmul.f32 -0.5, %v341_v26  ;;  %v357_v34 = vand.u32 2147483647, %v341_v26 }
 0x13f   : > { %589 = vlog2.f32 %v342_v27  ;;  %v346_v31 = vadd.f32 1.0, %v345_v29  ;;  %vm349_vm1 = vcmp.lt.f32.partialorder %v348_v32, 0.0004427343 }
 0x140   : > { %591 = vlog2.f32 %v351_v28  ;;  %v355_v33 = vadd.f32 1.0, %v354_v30  ;;  %vm358_vm2 = vcmp.lt.f32.partialorder %v357_v34, 0.0004427343 }
 0x141   : > { %v347_v38 = vmul.f32 %v346_v31, %v340_v25 }
 0x142   : > { %v356_v40 = vmul.f32 %v355_v33, %v341_v26 }
 0x149   : > { %v590_v35 = vpop.eup %589 }
 0x14a   : > { %v592_v36 = vpop.eup %591  ;;  %v344_v37 = vmul.f32 0.6931472, %v590_v35 }
 0x14b   : > { %v353_v39 = vmul.f32 0.6931472, %v592_v36 }
 0x14c   : > { %v350_v41 = vsel %vm349_vm1, %v347_v38, %v344_v37 }
 0x14d   : > { %v359_v42 = vsel %vm358_vm2, %v356_v40, %v353_v39  ;;  %360 = vst [vmem:[%s236_s5] sm:$0xff] %v350_v41 }
 0x14e   : > { %361 = vst [vmem:[%s236_s5 + $0x8] sm:$0xff] %v359_v42 }
 0x14f   : > { %664 = shalt.err (!%p661_p13)
}
 0x150   : > { %s665_s8 = scalar_lea.hbm %s941_s27, 256  ;;  %s669_s23 = scalar_lea.hbm %s993_s3, 512 }
 0x151   : > { %p666_p2 = scmp.ne.s32.totalorder %s941_s27, %s665_s8  ;;  %p670_p4 = scmp.lt.u32.totalorder %s941_s27, %s993_s3 }
 0x152   : > { %p671_p5 = scmp.lt.u32.totalorder %s669_s23, %s665_s8  ;;  %p673_p10 = scmp.lt.u32.totalorder %s665_s8, %s941_s27 }
 0x153   : > { %p667_p6 = pnand %p666_p2, %p1014_p11 }
 0x154   : > { %p672_p8 = por %p671_p5, %p670_p4 }
 0x155   : > { %p668_p12 = pneg %p667_p6 }
 0x156   : > { %p674_p1 = por %p673_p10, %p672_p8 }
 0x158   : > { %p675_p0 = pnand %p674_p1, %p668_p12 }
 0x15a   : > { %678 = shalt.err (!%p675_p0)
}
 0x15b   : > { %518 = dma.vmem_to_hbm [thread:$0]  (%p1014_p11), %s943_s6, 256, %s941_s27, %s363_s15  }
 0x15c PF: > { %s391_s18 = sand.u32 1, %s717_s12   ;;  %p1015_p9 = scmp.ne.s32.totalorder %s1004_s25, 0 }
 0x15d   : > { %p1016_p3 = scmp.ge.s32.totalorder %s737_s17, 2  ;;  %s392_s22 = scalar_lea.sflag [#allocation4], %s391_s18 }
 0x15f   : > { %p529_p7 = pnand %p1016_p3, %p1015_p9 }
 0x161   : > { %712 = dma.done.wait (!%p529_p7), %s392_s22, 256  }
 0x162   : > { %714 = vsyncadd (!%p529_p7), %s392_s22, 4294967040  ;;  %s20_s17 = sadd.s32 1, %s737_s17   ;;  %s1017_s12 = smov %s721_s13 }
 0x163   : > { %p17_p13 = scmp.ge.s32.totalorder %s20_s17, 4   ;;  %s1018_s13 = smov %s725_s14 }
 0x164   : > { %s1019_s14 = smov %s885_s28  ;;  %s1020_s15 = smov %s733_s16 }
 0x165   : > { %s1021_s16 = smov %s1023_s4  ;;  %19 = sbr.rel (!%p17_p13) target bundleno = 7 (0x7), region = 86 }
 0x16c   :  { %397 = vsyncpa [#allocation3], 1 }
 0x16d   :  { %399 = vsyncpa [#allocation3 + $0x1], 1 }
 0x16e   :  { %400 = vsyncpa [#allocation6], 1 }
 0x16f   :  { %402 = vsyncpa [#allocation6 + $0x1], 1 }
 0x170   :  { %403 = vsyncpa [#allocation4], 1 }
 0x171   :  { %405 = vsyncpa [#allocation4 + $0x1], 1 }

</bundles_post_ra>
